<compile_context>
chip_gen: v7x
topology: tpu7x:2x2x1
jax: 0.10.0
libtpu: 0.0.40
codegen_flags: <defaults>
</compile_context>

<pallas_src>
import jax
import jax.numpy as jnp
from jax.experimental import pallas as pl
from jax.experimental.pallas import tpu as pltpu

SEQ, BATCH, INPUT, HIDDEN, NUM_LAYERS = 8, 2, 16, 32, 2   # num_layers fixed to 2
FC_MID = 8


def dummy_rnn_kernel(x_ref,                       # (T*B, I)  flattened input
                     wih0_ref, whh0_ref, b0_ref,  # (I, H), (H, H), (1, H)
                     wih1_ref, whh1_ref, b1_ref,  # (H, H), (H, H), (1, H)
                     w12_ref, b12_ref,            # (H, I), (1, I)   fused head
                     out_ref):                    # (L, B, I)
    T, B, H = SEQ, BATCH, HIDDEN

    # ---- Layer 0: hoisted input->hidden matmul over all timesteps (bias folded in) ----
    xw0 = (jnp.dot(x_ref[...], wih0_ref[...], preferred_element_type=jnp.float32)
           + b0_ref[...])                          # (T*B, H)

    # Serial recurrence: only h @ Whh0 remains on the dependent chain.
    h = jnp.zeros((B, H), jnp.float32)
    hs = []
    for t in range(T):                             # static unroll, T is small
        h = jnp.tanh(xw0[t * B:(t + 1) * B]
                     + jnp.dot(h, whh0_ref[...], preferred_element_type=jnp.float32))
        hs.append(h)                               # register-resident, no VMEM scratch
    h0_last = h

    # ---- Layer 1: hoisted input->hidden matmul over the whole layer-0 sequence ----
    h_all = jnp.concatenate(hs, axis=0)            # (T*B, H)
    xw1 = (jnp.dot(h_all, wih1_ref[...], preferred_element_type=jnp.float32)
           + b1_ref[...])                          # (T*B, H)

    h = jnp.zeros((B, H), jnp.float32)
    for t in range(T):
        h = jnp.tanh(xw1[t * B:(t + 1) * B]
                     + jnp.dot(h, whh1_ref[...], preferred_element_type=jnp.float32))
    h1_last = h

    # ---- Fused head fct2(fct1(.)) -> single matmul, both layers in one block/store ----
    hn = jnp.concatenate([h0_last, h1_last], axis=0)          # (2*B, H)
    y = (jnp.dot(hn, w12_ref[...], preferred_element_type=jnp.float32)
         + b12_ref[...])                                      # (2*B, I)
    out_ref[...] = y.reshape(NUM_LAYERS, B, INPUT)            # one store


def init_params(key):
    """PyTorch-style uniform(-1/sqrt(fan), 1/sqrt(fan)) init, deterministic."""
    ks = jax.random.split(key, 14)
    u = lambda k, shape, bound: jax.random.uniform(k, shape, jnp.float32, -bound, bound)
    br = 1.0 / jnp.sqrt(jnp.float32(HIDDEN))
    p = {
        # nn.RNN weights (PyTorch shapes)
        "wih0": u(ks[0], (HIDDEN, INPUT), br),
        "whh0": u(ks[1], (HIDDEN, HIDDEN), br),
        "bih0": u(ks[2], (HIDDEN,), br),
        "bhh0": u(ks[3], (HIDDEN,), br),
        "wih1": u(ks[4], (HIDDEN, HIDDEN), br),
        "whh1": u(ks[5], (HIDDEN, HIDDEN), br),
        "bih1": u(ks[6], (HIDDEN,), br),
        "bhh1": u(ks[7], (HIDDEN,), br),
        # fct1: Linear(hidden, 8); fct2: Linear(8, input)
        "w1": u(ks[8], (FC_MID, HIDDEN), 1.0 / jnp.sqrt(jnp.float32(HIDDEN))),
        "b1": u(ks[9], (FC_MID,), 1.0 / jnp.sqrt(jnp.float32(HIDDEN))),
        "w2": u(ks[10], (INPUT, FC_MID), 1.0 / jnp.sqrt(jnp.float32(FC_MID))),
        "b2": u(ks[11], (INPUT,), 1.0 / jnp.sqrt(jnp.float32(FC_MID))),
    }
    return p


@jax.jit
def dummy_rnn_forward(x, p):
    # Glue: pre-transpose RNN weights so the kernel does `x @ W`, pre-sum the RNN biases,
    # and fuse the two Linear heads into one (H, I) matmul + (I,) bias.
    w12 = p["w1"].T @ p["w2"].T                  # (H, 8) @ (8, I) -> (H, I)
    b12 = p["b1"] @ p["w2"].T + p["b2"]          # (I,)
    args = (
        x.reshape(SEQ * BATCH, INPUT),
        p["wih0"].T, p["whh0"].T, (p["bih0"] + p["bhh0"]).reshape(1, HIDDEN),
        p["wih1"].T, p["whh1"].T, (p["bih1"] + p["bhh1"]).reshape(1, HIDDEN),
        w12, b12.reshape(1, INPUT),
    )
    vmem = pl.BlockSpec(memory_space=pltpu.MemorySpace.VMEM)
    return pl.pallas_call(
        dummy_rnn_kernel,
        out_shape=jax.ShapeDtypeStruct((NUM_LAYERS, BATCH, INPUT), jnp.float32),
        in_specs=[vmem] * len(args),
        out_specs=vmem,
    )(*args)
    # TODO(synk): if batch is ever scaled up, add a "parallel" grid axis over batch tiles
    # (2x on v7x megacore) and feed bf16 operands on v6e/v7x; pointless at B=2.


def reference_forward(x, p):
    """Pure-JAX reference mirroring PyTorch nn.RNN(tanh) + fct1 + fct2 on h_n."""
    T, B, _ = x.shape
    layer_in = x
    h_lasts = []
    for l in range(NUM_LAYERS):
        wih, whh = p[f"wih{l}"], p[f"whh{l}"]
        bih, bhh = p[f"bih{l}"], p[f"bhh{l}"]
        h = jnp.zeros((B, HIDDEN), jnp.float32)
        outs = []
        for t in range(T):
            h = jnp.tanh(layer_in[t] @ wih.T + bih + h @ whh.T + bhh)
            outs.append(h)
        layer_in = jnp.stack(outs)
        h_lasts.append(h)
    hn = jnp.stack(h_lasts)                      # (L, B, H)
    z = hn @ p["w1"].T + p["b1"]                 # (L, B, 8)
    return z @ p["w2"].T + p["b2"]               # (L, B, I)


if __name__ == "__main__":
    key = jax.random.PRNGKey(0)
    kx, kp = jax.random.split(key)
    x = jax.random.normal(kx, (SEQ, BATCH, INPUT), jnp.float32)
    params = init_params(kp)

    out = dummy_rnn_forward(x, params)
    out = jax.block_until_ready(out)

    ref = reference_forward(x, params)
    assert out.shape == (NUM_LAYERS, BATCH, INPUT)
    # Fused head (W1@W2 precomputed) changes f32 rounding slightly; stays well inside 2e-3.
    assert jnp.allclose(out, ref, atol=2e-3, rtol=2e-3), "mismatch vs pure-JAX reference"

    print("KERNEL_OK")
</pallas_src>

<mosaic_0001>
module attributes {stable_mosaic.version = 11 : i64} {
  func.func @dummy_rnn_kernel(%arg0: memref<16x16xf32, #tpu.memory_space<vmem>>, %arg1: memref<16x32xf32, #tpu.memory_space<vmem>>, %arg2: memref<32x32xf32, #tpu.memory_space<vmem>>, %arg3: memref<1x32xf32, #tpu.memory_space<vmem>>, %arg4: memref<32x32xf32, #tpu.memory_space<vmem>>, %arg5: memref<32x32xf32, #tpu.memory_space<vmem>>, %arg6: memref<1x32xf32, #tpu.memory_space<vmem>>, %arg7: memref<32x16xf32, #tpu.memory_space<vmem>>, %arg8: memref<1x16xf32, #tpu.memory_space<vmem>>, %arg9: memref<2x2x16xf32, #tpu.memory_space<vmem>>) attributes {dimension_semantics = [], scalar_prefetch = 0 : i64, scratch_operands = 0 : i64, tpu.core_type = #tpu.core_type<tc>} {
    %c0 = arith.constant 0 : index
    %c0_0 = arith.constant 0 : index
    %0 = vector.load %arg0[%c0, %c0_0] : memref<16x16xf32, #tpu.memory_space<vmem>>, vector<16x16xf32>
    %c0_1 = arith.constant 0 : index
    %c0_2 = arith.constant 0 : index
    %1 = vector.load %arg1[%c0_1, %c0_2] : memref<16x32xf32, #tpu.memory_space<vmem>>, vector<16x32xf32>
    %cst = arith.constant dense<0.000000e+00> : vector<16x32xf32>
    %2 = tpu.matmul %0, %1, %cst {dimension_numbers = #tpu.dot_dimension_numbers<[1], [0], [0], [1], [0, 0, 1, 1], [], []>} : vector<16x16xf32>, vector<16x32xf32>, vector<16x32xf32> -> vector<16x32xf32>
    %c0_3 = arith.constant 0 : index
    %c0_4 = arith.constant 0 : index
    %3 = vector.load %arg3[%c0_3, %c0_4] : memref<1x32xf32, #tpu.memory_space<vmem>>, vector<1x32xf32>
    %4 = vector.broadcast %3 : vector<1x32xf32> to vector<16x32xf32>
    %5 = arith.addf %2, %4 : vector<16x32xf32>
    %cst_5 = arith.constant 0.000000e+00 : f32
    %6 = vector.broadcast %cst_5 : f32 to vector<2x32xf32>
    %7 = vector.extract_strided_slice %5 {offsets = [0, 0], sizes = [2, 32], strides = [1, 1]} : vector<16x32xf32> to vector<2x32xf32>
    %c0_6 = arith.constant 0 : index
    %c0_7 = arith.constant 0 : index
    %8 = vector.load %arg2[%c0_6, %c0_7] : memref<32x32xf32, #tpu.memory_space<vmem>>, vector<32x32xf32>
    %cst_8 = arith.constant dense<0.000000e+00> : vector<2x32xf32>
    %9 = tpu.matmul %6, %8, %cst_8 {dimension_numbers = #tpu.dot_dimension_numbers<[1], [0], [0], [1], [0, 0, 1, 1], [], []>} : vector<2x32xf32>, vector<32x32xf32>, vector<2x32xf32> -> vector<2x32xf32>
    %10 = arith.addf %7, %9 : vector<2x32xf32>
    %11 = math.tanh %10 : vector<2x32xf32>
    %12 = vector.extract_strided_slice %5 {offsets = [2, 0], sizes = [2, 32], strides = [1, 1]} : vector<16x32xf32> to vector<2x32xf32>
    %c0_9 = arith.constant 0 : index
    %c0_10 = arith.constant 0 : index
    %13 = vector.load %arg2[%c0_9, %c0_10] : memref<32x32xf32, #tpu.memory_space<vmem>>, vector<32x32xf32>
    %cst_11 = arith.constant dense<0.000000e+00> : vector<2x32xf32>
    %14 = tpu.matmul %11, %13, %cst_11 {dimension_numbers = #tpu.dot_dimension_numbers<[1], [0], [0], [1], [0, 0, 1, 1], [], []>} : vector<2x32xf32>, vector<32x32xf32>, vector<2x32xf32> -> vector<2x32xf32>
    %15 = arith.addf %12, %14 : vector<2x32xf32>
    %16 = math.tanh %15 : vector<2x32xf32>
    %17 = vector.extract_strided_slice %5 {offsets = [4, 0], sizes = [2, 32], strides = [1, 1]} : vector<16x32xf32> to vector<2x32xf32>
    %c0_12 = arith.constant 0 : index
    %c0_13 = arith.constant 0 : index
    %18 = vector.load %arg2[%c0_12, %c0_13] : memref<32x32xf32, #tpu.memory_space<vmem>>, vector<32x32xf32>
    %cst_14 = arith.constant dense<0.000000e+00> : vector<2x32xf32>
    %19 = tpu.matmul %16, %18, %cst_14 {dimension_numbers = #tpu.dot_dimension_numbers<[1], [0], [0], [1], [0, 0, 1, 1], [], []>} : vector<2x32xf32>, vector<32x32xf32>, vector<2x32xf32> -> vector<2x32xf32>
    %20 = arith.addf %17, %19 : vector<2x32xf32>
    %21 = math.tanh %20 : vector<2x32xf32>
    %22 = vector.extract_strided_slice %5 {offsets = [6, 0], sizes = [2, 32], strides = [1, 1]} : vector<16x32xf32> to vector<2x32xf32>
    %c0_15 = arith.constant 0 : index
    %c0_16 = arith.constant 0 : index
    %23 = vector.load %arg2[%c0_15, %c0_16] : memref<32x32xf32, #tpu.memory_space<vmem>>, vector<32x32xf32>
    %cst_17 = arith.constant dense<0.000000e+00> : vector<2x32xf32>
    %24 = tpu.matmul %21, %23, %cst_17 {dimension_numbers = #tpu.dot_dimension_numbers<[1], [0], [0], [1], [0, 0, 1, 1], [], []>} : vector<2x32xf32>, vector<32x32xf32>, vector<2x32xf32> -> vector<2x32xf32>
    %25 = arith.addf %22, %24 : vector<2x32xf32>
    %26 = math.tanh %25 : vector<2x32xf32>
    %27 = vector.extract_strided_slice %5 {offsets = [8, 0], sizes = [2, 32], strides = [1, 1]} : vector<16x32xf32> to vector<2x32xf32>
    %c0_18 = arith.constant 0 : index
    %c0_19 = arith.constant 0 : index
    %28 = vector.load %arg2[%c0_18, %c0_19] : memref<32x32xf32, #tpu.memory_space<vmem>>, vector<32x32xf32>
    %cst_20 = arith.constant dense<0.000000e+00> : vector<2x32xf32>
    %29 = tpu.matmul %26, %28, %cst_20 {dimension_numbers = #tpu.dot_dimension_numbers<[1], [0], [0], [1], [0, 0, 1, 1], [], []>} : vector<2x32xf32>, vector<32x32xf32>, vector<2x32xf32> -> vector<2x32xf32>
    %30 = arith.addf %27, %29 : vector<2x32xf32>
    %31 = math.tanh %30 : vector<2x32xf32>
    %32 = vector.extract_strided_slice %5 {offsets = [10, 0], sizes = [2, 32], strides = [1, 1]} : vector<16x32xf32> to vector<2x32xf32>
    %c0_21 = arith.constant 0 : index
    %c0_22 = arith.constant 0 : index
    %33 = vector.load %arg2[%c0_21, %c0_22] : memref<32x32xf32, #tpu.memory_space<vmem>>, vector<32x32xf32>
    %cst_23 = arith.constant dense<0.000000e+00> : vector<2x32xf32>
    %34 = tpu.matmul %31, %33, %cst_23 {dimension_numbers = #tpu.dot_dimension_numbers<[1], [0], [0], [1], [0, 0, 1, 1], [], []>} : vector<2x32xf32>, vector<32x32xf32>, vector<2x32xf32> -> vector<2x32xf32>
    %35 = arith.addf %32, %34 : vector<2x32xf32>
    %36 = math.tanh %35 : vector<2x32xf32>
    %37 = vector.extract_strided_slice %5 {offsets = [12, 0], sizes = [2, 32], strides = [1, 1]} : vector<16x32xf32> to vector<2x32xf32>
    %c0_24 = arith.constant 0 : index
    %c0_25 = arith.constant 0 : index
    %38 = vector.load %arg2[%c0_24, %c0_25] : memref<32x32xf32, #tpu.memory_space<vmem>>, vector<32x32xf32>
    %cst_26 = arith.constant dense<0.000000e+00> : vector<2x32xf32>
    %39 = tpu.matmul %36, %38, %cst_26 {dimension_numbers = #tpu.dot_dimension_numbers<[1], [0], [0], [1], [0, 0, 1, 1], [], []>} : vector<2x32xf32>, vector<32x32xf32>, vector<2x32xf32> -> vector<2x32xf32>
    %40 = arith.addf %37, %39 : vector<2x32xf32>
    %41 = math.tanh %40 : vector<2x32xf32>
    %42 = vector.extract_strided_slice %5 {offsets = [14, 0], sizes = [2, 32], strides = [1, 1]} : vector<16x32xf32> to vector<2x32xf32>
    %c0_27 = arith.constant 0 : index
    %c0_28 = arith.constant 0 : index
    %43 = vector.load %arg2[%c0_27, %c0_28] : memref<32x32xf32, #tpu.memory_space<vmem>>, vector<32x32xf32>
    %cst_29 = arith.constant dense<0.000000e+00> : vector<2x32xf32>
    %44 = tpu.matmul %41, %43, %cst_29 {dimension_numbers = #tpu.dot_dimension_numbers<[1], [0], [0], [1], [0, 0, 1, 1], [], []>} : vector<2x32xf32>, vector<32x32xf32>, vector<2x32xf32> -> vector<2x32xf32>
    %45 = arith.addf %42, %44 : vector<2x32xf32>
    %46 = math.tanh %45 : vector<2x32xf32>
    %47 = tpu.concatenate %11, %16, %21, %26, %31, %36, %41, %46 in 0 : vector<2x32xf32>, vector<2x32xf32>, vector<2x32xf32>, vector<2x32xf32>, vector<2x32xf32>, vector<2x32xf32>, vector<2x32xf32>, vector<2x32xf32> -> vector<16x32xf32>
    %c0_30 = arith.constant 0 : index
    %c0_31 = arith.constant 0 : index
    %48 = vector.load %arg4[%c0_30, %c0_31] : memref<32x32xf32, #tpu.memory_space<vmem>>, vector<32x32xf32>
    %cst_32 = arith.constant dense<0.000000e+00> : vector<16x32xf32>
    %49 = tpu.matmul %47, %48, %cst_32 {dimension_numbers = #tpu.dot_dimension_numbers<[1], [0], [0], [1], [0, 0, 1, 1], [], []>} : vector<16x32xf32>, vector<32x32xf32>, vector<16x32xf32> -> vector<16x32xf32>
    %c0_33 = arith.constant 0 : index
    %c0_34 = arith.constant 0 : index
    %50 = vector.load %arg6[%c0_33, %c0_34] : memref<1x32xf32, #tpu.memory_space<vmem>>, vector<1x32xf32>
    %51 = vector.broadcast %50 : vector<1x32xf32> to vector<16x32xf32>
    %52 = arith.addf %49, %51 : vector<16x32xf32>
    %cst_35 = arith.constant 0.000000e+00 : f32
    %53 = vector.broadcast %cst_35 : f32 to vector<2x32xf32>
    %54 = vector.extract_strided_slice %52 {offsets = [0, 0], sizes = [2, 32], strides = [1, 1]} : vector<16x32xf32> to vector<2x32xf32>
    %c0_36 = arith.constant 0 : index
    %c0_37 = arith.constant 0 : index
    %55 = vector.load %arg5[%c0_36, %c0_37] : memref<32x32xf32, #tpu.memory_space<vmem>>, vector<32x32xf32>
    %cst_38 = arith.constant dense<0.000000e+00> : vector<2x32xf32>
    %56 = tpu.matmul %53, %55, %cst_38 {dimension_numbers = #tpu.dot_dimension_numbers<[1], [0], [0], [1], [0, 0, 1, 1], [], []>} : vector<2x32xf32>, vector<32x32xf32>, vector<2x32xf32> -> vector<2x32xf32>
    %57 = arith.addf %54, %56 : vector<2x32xf32>
    %58 = math.tanh %57 : vector<2x32xf32>
    %59 = vector.extract_strided_slice %52 {offsets = [2, 0], sizes = [2, 32], strides = [1, 1]} : vector<16x32xf32> to vector<2x32xf32>
    %c0_39 = arith.constant 0 : index
    %c0_40 = arith.constant 0 : index
    %60 = vector.load %arg5[%c0_39, %c0_40] : memref<32x32xf32, #tpu.memory_space<vmem>>, vector<32x32xf32>
    %cst_41 = arith.constant dense<0.000000e+00> : vector<2x32xf32>
    %61 = tpu.matmul %58, %60, %cst_41 {dimension_numbers = #tpu.dot_dimension_numbers<[1], [0], [0], [1], [0, 0, 1, 1], [], []>} : vector<2x32xf32>, vector<32x32xf32>, vector<2x32xf32> -> vector<2x32xf32>
    %62 = arith.addf %59, %61 : vector<2x32xf32>
    %63 = math.tanh %62 : vector<2x32xf32>
    %64 = vector.extract_strided_slice %52 {offsets = [4, 0], sizes = [2, 32], strides = [1, 1]} : vector<16x32xf32> to vector<2x32xf32>
    %c0_42 = arith.constant 0 : index
    %c0_43 = arith.constant 0 : index
    %65 = vector.load %arg5[%c0_42, %c0_43] : memref<32x32xf32, #tpu.memory_space<vmem>>, vector<32x32xf32>
    %cst_44 = arith.constant dense<0.000000e+00> : vector<2x32xf32>
    %66 = tpu.matmul %63, %65, %cst_44 {dimension_numbers = #tpu.dot_dimension_numbers<[1], [0], [0], [1], [0, 0, 1, 1], [], []>} : vector<2x32xf32>, vector<32x32xf32>, vector<2x32xf32> -> vector<2x32xf32>
    %67 = arith.addf %64, %66 : vector<2x32xf32>
    %68 = math.tanh %67 : vector<2x32xf32>
    %69 = vector.extract_strided_slice %52 {offsets = [6, 0], sizes = [2, 32], strides = [1, 1]} : vector<16x32xf32> to vector<2x32xf32>
    %c0_45 = arith.constant 0 : index
    %c0_46 = arith.constant 0 : index
    %70 = vector.load %arg5[%c0_45, %c0_46] : memref<32x32xf32, #tpu.memory_space<vmem>>, vector<32x32xf32>
    %cst_47 = arith.constant dense<0.000000e+00> : vector<2x32xf32>
    %71 = tpu.matmul %68, %70, %cst_47 {dimension_numbers = #tpu.dot_dimension_numbers<[1], [0], [0], [1], [0, 0, 1, 1], [], []>} : vector<2x32xf32>, vector<32x32xf32>, vector<2x32xf32> -> vector<2x32xf32>
    %72 = arith.addf %69, %71 : vector<2x32xf32>
    %73 = math.tanh %72 : vector<2x32xf32>
    %74 = vector.extract_strided_slice %52 {offsets = [8, 0], sizes = [2, 32], strides = [1, 1]} : vector<16x32xf32> to vector<2x32xf32>
    %c0_48 = arith.constant 0 : index
    %c0_49 = arith.constant 0 : index
    %75 = vector.load %arg5[%c0_48, %c0_49] : memref<32x32xf32, #tpu.memory_space<vmem>>, vector<32x32xf32>
    %cst_50 = arith.constant dense<0.000000e+00> : vector<2x32xf32>
    %76 = tpu.matmul %73, %75, %cst_50 {dimension_numbers = #tpu.dot_dimension_numbers<[1], [0], [0], [1], [0, 0, 1, 1], [], []>} : vector<2x32xf32>, vector<32x32xf32>, vector<2x32xf32> -> vector<2x32xf32>
    %77 = arith.addf %74, %76 : vector<2x32xf32>
    %78 = math.tanh %77 : vector<2x32xf32>
    %79 = vector.extract_strided_slice %52 {offsets = [10, 0], sizes = [2, 32], strides = [1, 1]} : vector<16x32xf32> to vector<2x32xf32>
    %c0_51 = arith.constant 0 : index
    %c0_52 = arith.constant 0 : index
    %80 = vector.load %arg5[%c0_51, %c0_52] : memref<32x32xf32, #tpu.memory_space<vmem>>, vector<32x32xf32>
    %cst_53 = arith.constant dense<0.000000e+00> : vector<2x32xf32>
    %81 = tpu.matmul %78, %80, %cst_53 {dimension_numbers = #tpu.dot_dimension_numbers<[1], [0], [0], [1], [0, 0, 1, 1], [], []>} : vector<2x32xf32>, vector<32x32xf32>, vector<2x32xf32> -> vector<2x32xf32>
    %82 = arith.addf %79, %81 : vector<2x32xf32>
    %83 = math.tanh %82 : vector<2x32xf32>
    %84 = vector.extract_strided_slice %52 {offsets = [12, 0], sizes = [2, 32], strides = [1, 1]} : vector<16x32xf32> to vector<2x32xf32>
    %c0_54 = arith.constant 0 : index
    %c0_55 = arith.constant 0 : index
    %85 = vector.load %arg5[%c0_54, %c0_55] : memref<32x32xf32, #tpu.memory_space<vmem>>, vector<32x32xf32>
    %cst_56 = arith.constant dense<0.000000e+00> : vector<2x32xf32>
    %86 = tpu.matmul %83, %85, %cst_56 {dimension_numbers = #tpu.dot_dimension_numbers<[1], [0], [0], [1], [0, 0, 1, 1], [], []>} : vector<2x32xf32>, vector<32x32xf32>, vector<2x32xf32> -> vector<2x32xf32>
    %87 = arith.addf %84, %86 : vector<2x32xf32>
    %88 = math.tanh %87 : vector<2x32xf32>
    %89 = vector.extract_strided_slice %52 {offsets = [14, 0], sizes = [2, 32], strides = [1, 1]} : vector<16x32xf32> to vector<2x32xf32>
    %c0_57 = arith.constant 0 : index
    %c0_58 = arith.constant 0 : index
    %90 = vector.load %arg5[%c0_57, %c0_58] : memref<32x32xf32, #tpu.memory_space<vmem>>, vector<32x32xf32>
    %cst_59 = arith.constant dense<0.000000e+00> : vector<2x32xf32>
    %91 = tpu.matmul %88, %90, %cst_59 {dimension_numbers = #tpu.dot_dimension_numbers<[1], [0], [0], [1], [0, 0, 1, 1], [], []>} : vector<2x32xf32>, vector<32x32xf32>, vector<2x32xf32> -> vector<2x32xf32>
    %92 = arith.addf %89, %91 : vector<2x32xf32>
    %93 = math.tanh %92 : vector<2x32xf32>
    %94 = tpu.concatenate %46, %93 in 0 : vector<2x32xf32>, vector<2x32xf32> -> vector<4x32xf32>
    %c0_60 = arith.constant 0 : index
    %c0_61 = arith.constant 0 : index
    %95 = vector.load %arg7[%c0_60, %c0_61] : memref<32x16xf32, #tpu.memory_space<vmem>>, vector<32x16xf32>
    %cst_62 = arith.constant dense<0.000000e+00> : vector<4x16xf32>
    %96 = tpu.matmul %94, %95, %cst_62 {dimension_numbers = #tpu.dot_dimension_numbers<[1], [0], [0], [1], [0, 0, 1, 1], [], []>} : vector<4x32xf32>, vector<32x16xf32>, vector<4x16xf32> -> vector<4x16xf32>
    %c0_63 = arith.constant 0 : index
    %c0_64 = arith.constant 0 : index
    %97 = vector.load %arg8[%c0_63, %c0_64] : memref<1x16xf32, #tpu.memory_space<vmem>>, vector<1x16xf32>
    %98 = vector.broadcast %97 : vector<1x16xf32> to vector<4x16xf32>
    %99 = arith.addf %96, %98 : vector<4x16xf32>
    %100 = vector.shape_cast %99 : vector<4x16xf32> to vector<2x2x16xf32>
    %c0_65 = arith.constant 0 : index
    %c0_66 = arith.constant 0 : index
    %c0_67 = arith.constant 0 : index
    %101 = vector.load %arg9[%c0_65, %c0_66, %c0_67] : memref<2x2x16xf32, #tpu.memory_space<vmem>>, vector<2x2x16xf32>
    tpu.vector_store %arg9[%c0_65, %c0_66, %c0_67], %100 {strides = array<i32>} : memref<2x2x16xf32, #tpu.memory_space<vmem>>, vector<2x2x16xf32>,
    return
  }
}

</mosaic_0001>

<bundles_post_ra>
// kernel: dummy_rnn_forward.1
= control target key start
LH: loop header
LB: loop body
LE: loop exit
PB: predicated region body
PF: predicated region fallthrough
CT: control target
= control target key end

     0   :  { %vm44_vm0 = vcmask 130048   ;;  %v2099_v3 = vmov 0.0|0.0   ;;  %vm2100_vm1 = vmmov 0   ;;  %v2101_v10 = vmov 0.0   ;;  %s2389_s0 = inlined_call_operand.vmem [shape: f32[16,16], index: 0, kind: input, shape index: {}]   ;;  %s2390_s1 = inlined_call_operand.vmem [shape: f32[16,32], index: 1, kind: input, shape index: {}]   ;;  %s2391_s2 = inlined_call_operand.vmem [shape: f32[32,32], index: 2, kind: input, shape index: {}]   ;;  %s2392_s3 = inlined_call_operand.vmem [shape: f32[1,32], index: 3, kind: input, shape index: {}]   ;;  %s2393_s4 = inlined_call_operand.vmem [shape: f32[32,32], index: 4, kind: input, shape index: {}]   ;;  %s2394_s5 = inlined_call_operand.vmem [shape: f32[32,32], index: 5, kind: input, shape index: {}]   ;;  %s2395_s6 = inlined_call_operand.vmem [shape: f32[1,32], index: 6, kind: input, shape index: {}]   ;;  %s2396_s7 = inlined_call_operand.vmem [shape: f32[32,16], index: 7, kind: input, shape index: {}]   ;;  %s2397_s8 = inlined_call_operand.vmem [shape: f32[1,16], index: 8, kind: input, shape index: {}]   ;;  %s2398_s9 = inlined_call_operand.hbm [shape: f32[2,2,16], index: 9, kind: output, shape index: {}]  }
   0x1   :  { %v35_v0 = vld [vmem:[%s2390_s1] sm:$0xff]  ;;  %v36_v1 = vld [vmem:[%s2390_s1 + $0x8] sm:$0xff]  ;;  %1926 = vmatprep.subr.bf16.mxu1 %v2099_v3  ;;  %v128_v8 = vld [vmem:[%s2391_s2 + $0x10] sm:$0xff]  ;;  %1732 = vmatprep.mubr.msk.f32.mxu1 %vm2100_vm1, %v2101_v10 }
   0x2   :  { %v126_v2 = vld [vmem:[%s2391_s2] sm:$0xff]  ;;  %v1922_v4 = vpack.c.bf16 %v36_v1, %v35_v0  ;;  %v127_v5 = vld [vmem:[%s2391_s2 + $0x8] sm:$0xff]  ;;  %v129_v9 = vld [vmem:[%s2391_s2 + $0x18] sm:$0xff] }
   0x3   :  { %v33_v6 = vld [vmem:[%s2389_s0] sm:$0xff]  ;;  %v2172_v7 = vpack.c.bf16 %v127_v5, %v126_v2 }
   0x4   :  { %1721 = vmatprep.mubr.msk.f32.mxu0 %vm44_vm0, %v33_v6 }
   0x5   :  { %14 = vsyncpa [#allocation3], 0  ;;  %1923 = vmatprep.subr.bf16.mxu0 %v1922_v4  ;;  %1928 = vmatpush3.bf16.msra.mxu1 %v2172_v7  ;;  %v34_v11 = vld [vmem:[%s2389_s0 + $0x8] sm:$0xff]  ;;  %v2187_v12 = vpack.c.bf16 %v129_v9, %v128_v8  ;;  %v1600_v13 = vld [vmem:[%s2392_s3] ss:$0 sm:$0xff]  ;;  %vm130_vm2 = vcmask 261120  }
   0x6   :  { %1925 = vmatpush3.bf16.msra.mxu0 %v1922_v4  ;;  %1929 = vmatprep.subr.bf16.mxu1 %v2099_v3  ;;  %vm754_vm3 = vcmask 1041408   ;;  %vm756_vm4 = vcmask 1043456   ;;  %vm758_vm5 = vcmask 1045504   ;;  %v763_v61 = vld [vmem:[%s2393_s4] sm:$0xff]  ;;  %v764_v62 = vld [vmem:[%s2393_s4 + $0x8] sm:$0xff]  ;;  %v765_v2 = vld [vmem:[%s2393_s4 + $0x10] sm:$0xff] }
   0x7   :  { %1932 = vmatprep.subr.bf16.mxu0 %v2099_v3  ;;  %v855_v63 = vld [vmem:[%s2394_s5] sm:$0xff]  ;;  %v1974_v0 = vpack.c.bf16 %v764_v62, %v763_v61  ;;  %v856_v1 = vld [vmem:[%s2394_s5 + $0x8] sm:$0xff]  ;;  %v766_v4 = vld [vmem:[%s2393_s4 + $0x18] sm:$0xff]  ;;  %s2103_s2 = smov [#allocation2]   ;;  %vm1581_vm6 = vcmask 123904  }
   0x8   :  { %v2277_v5 = vpack.c.bf16 %v856_v1, %v855_v63  ;;  %v1978_v6 = vpack.c.bf16 %v766_v4, %v765_v2  ;;  %v858_v8 = vld [vmem:[%s2394_s5 + $0x18] sm:$0xff]  ;;  %v1487_v61 = vld [vmem:[%s2396_s7 + $0x8] sm:$0xff]  ;;  %s1589_s3 = sshll.u32 %s2103_s2, 4  ;;  %s1590_s3 = int_to_ptr.vmem [resolvable:$true] %s1589_s3 }
   0x9   :  { %1722 = vmatmul.mubr.msk.f32.vlgmr.msra.gmra.mrb[0].mxu0 %vm44_vm0, %v34_v11  ;;  %1931 = vmatpush3.bf16.msra.mxu1 %v2187_v12  ;;  %v1489_v63 = vld [vmem:[%s2396_s7 + $0x18] sm:$0xff]  ;;  %s2075_s24 = scalar_lea.vmem %s1590_s3, 64  ;;  %p2080_p1 = scmp.lt.s32.totalorder %s1590_s3, %s1590_s3 }
   0xa   :  { %1934 = vmatpush3.bf16.msra.mxu0 %v2172_v7  ;;  %1743 = vmatprep.mubr.msk.f32.mxu0 %vm2100_vm1, %v2101_v10  ;;  %p2076_p0 = scmp.ne.s32.totalorder %s1590_s3, %s2075_s24  ;;  %p2081_p2 = scmp.lt.s32.totalorder %s2075_s24, %s2075_s24 }
   0xb   :  { %1935 = vmatprep.subr.bf16.mxu0 %v2099_v3  ;;  %1938 = vmatprep.subr.bf16.mxu1 %v2099_v3 }
   0xc   :  { %1733 = vmatmul.mubr.f32.vlgmr.msra.gmra.mrb[0].mxu1 %v2101_v10  ;;  %p2082_p3 = por %p2081_p2, %p2080_p1 }
   0xd   :  { %1940 = vmatpush3.bf16.msra.mxu1 %v2172_v7  ;;  %1754 = vmatprep.mubr.msk.f32.mxu1 %vm2100_vm1, %v2101_v10 }
   0xe   :  { %1937 = vmatpush3.bf16.msra.mxu0 %v2187_v12  ;;  %1941 = vmatprep.subr.bf16.mxu1 %v2099_v3  ;;  %p2083_p4 = pnand %p2082_p3, %p2076_p0 }
   0xf   :  { %1944 = vmatprep.subr.bf16.mxu0 %v2099_v3 }
  0x11   :  { %1943 = vmatpush3.bf16.msra.mxu1 %v2187_v12 }
  0x12   :  { %1950 = vmatprep.subr.bf16.mxu1 %v2099_v3 }
  0xdc   :  { %v1723_v14 = vpop.f32.mrb[0].mxu0 }
  0xdd   :  { %v2210_v15 = vadd.f32 %v1723_v14, %v1600_v13  ;;  %v117_v16 = vpop.f32.mrb[1].mxu0 }
  0xde   :  { %v118_v17 = vadd.f32 %v1600_v13, %v117_v16 }
  0xdf   :  { %v200_v18 = vpop.f32.mrb[0].mxu1 }
  0xe0   :  { %v204_v19 = vadd.f32 %v200_v18, %v118_v17  ;;  %v1734_v20 = vpop.f32.mrb[1].mxu1 }
  0xe2   :  { %2043 = vtanh.f32 %v204_v19  ;;  %v1610_v19 = vld [vmem:[%s2395_s6] ss:$0 sm:$0xff] }
  0xec   :  { %v2044_v21 = vpop.eup %2043 }
  0xed   :  { %1744 = vmatmul.mubr.msk.f32.vlgmr.msra.gmra.mrb[2].mxu0 %vm130_vm2, %v2044_v21 }
  0xee   :  { %1946 = vmatpush3.bf16.msra.mxu0 %v2172_v7  ;;  %1765 = vmatprep.mubr.msk.f32.mxu0 %vm2100_vm1, %v2101_v10 }
  0xef   :  { %1947 = vmatprep.subr.bf16.mxu0 %v2099_v3 }
  0xf2   :  { %1949 = vmatpush3.bf16.msra.mxu0 %v2187_v12 }
  0xf3   :  { %1956 = vmatprep.subr.bf16.mxu0 %v2099_v3 }
 0x1c0   :  { %v275_v22 = vpop.f32.mrb[2].mxu0 }
 0x1c1   :  { %v280_v23 = vrot.slane %v275_v22, 6  ;;  %v1745_v24 = vpop.f32.mrb[3].mxu0 }
 0x1c3   :  { %v282_v25 = vadd.f32 %v280_v23, %v118_v17 }
 0x1c5   :  { %2045 = vtanh.f32 %v282_v25 }
 0x1cf   :  { %v2046_v26 = vpop.eup %2045 }
 0x1d0   :  { %v285_v27 = vrot.slane %v2046_v26, 2  ;;  %v755_v33 = vsel %vm754_vm3, %v2044_v21, %v2046_v26 }
 0x1d2   :  { %1755 = vmatmul.mubr.msk.f32.vlgmr.msra.gmra.mrb[2].mxu1 %vm130_vm2, %v285_v27 }
 0x1d3   :  { %1952 = vmatpush3.bf16.msra.mxu1 %v2172_v7  ;;  %1776 = vmatprep.mubr.msk.f32.mxu1 %vm2100_vm1, %v2101_v10 }
 0x1d4   :  { %1953 = vmatprep.subr.bf16.mxu1 %v2099_v3 }
 0x1d7   :  { %1955 = vmatpush3.bf16.msra.mxu1 %v2187_v12 }
 0x1d8   :  { %1962 = vmatprep.subr.bf16.mxu1 %v2099_v3 }
 0x2a5   :  { %v354_v28 = vpop.f32.mrb[2].mxu1 }
 0x2a6   :  { %v359_v29 = vrot.slane %v354_v28, 4  ;;  %v1756_v30 = vpop.f32.mrb[3].mxu1 }
 0x2a8   :  { %v361_v31 = vadd.f32 %v359_v29, %v118_v17 }
 0x2aa   :  { %2047 = vtanh.f32 %v361_v31 }
 0x2b4   :  { %v2048_v32 = vpop.eup %2047 }
 0x2b5   :  { %v364_v34 = vrot.slane %v2048_v32, 4  ;;  %v757_v35 = vsel %vm756_vm4, %v755_v33, %v2048_v32 }
 0x2b7   :  { %1766 = vmatmul.mubr.msk.f32.vlgmr.msra.gmra.mrb[4].mxu0 %vm130_vm2, %v364_v34 }
 0x2b8   :  { %1958 = vmatpush3.bf16.msra.mxu0 %v2172_v7  ;;  %1787 = vmatprep.mubr.msk.f32.mxu0 %vm2100_vm1, %v2101_v10 }
 0x2b9   :  { %1959 = vmatprep.subr.bf16.mxu0 %v2099_v3 }
 0x2bc   :  { %1961 = vmatpush3.bf16.msra.mxu0 %v2187_v12 }
 0x2bd   :  { %1968 = vmatprep.subr.bf16.mxu0 %v2099_v3 }
 0x38a   :  { %v433_v36 = vpop.f32.mrb[4].mxu0 }
 0x38b   :  { %v438_v37 = vrot.slane %v433_v36, 2  ;;  %v1767_v38 = vpop.f32.mrb[5].mxu0 }
 0x38d   :  { %v440_v39 = vadd.f32 %v438_v37, %v118_v17 }
 0x38f   :  { %2049 = vtanh.f32 %v440_v39 }
 0x399   :  { %v2050_v40 = vpop.eup %2049 }
 0x39a   :  { %v443_v41 = vrot.slane %v2050_v40, 6  ;;  %v759_v42 = vsel %vm758_vm5, %v757_v35, %v2050_v40 }
 0x39c   :  { %1777 = vmatmul.mubr.msk.f32.vlgmr.msra.gmra.mrb[4].mxu1 %vm130_vm2, %v443_v41 }
 0x39d   :  { %1964 = vmatpush3.bf16.msra.mxu1 %v2172_v7  ;;  %1798 = vmatprep.mubr.msk.f32.mxu1 %vm2100_vm1, %v2101_v10 }
 0x39e   :  { %1965 = vmatprep.subr.bf16.mxu1 %v2099_v3 }
 0x3a1   :  { %1967 = vmatpush3.bf16.msra.mxu1 %v2187_v12 }
 0x3a2   :  { %1975 = vmatprep.subr.bf16.mxu1 %v1974_v0 }
 0x46f   :  { %v512_v43 = vpop.f32.mrb[4].mxu1 }
 0x470   :  { %v516_v44 = vadd.f32 %v512_v43, %v2210_v15  ;;  %v1778_v45 = vpop.f32.mrb[5].mxu1 }
 0x472   :  { %2051 = vtanh.f32 %v516_v44 }
 0x47c   :  { %v2052_v46 = vpop.eup %2051 }
 0x47d   :  { %1788 = vmatmul.mubr.msk.f32.vlgmr.msra.gmra.mrb[6].mxu0 %vm130_vm2, %v2052_v46 }
 0x47e   :  { %1970 = vmatpush3.bf16.msra.mxu0 %v2172_v7  ;;  %1809 = vmatprep.mubr.msk.f32.mxu0 %vm2100_vm1, %v2101_v10  ;;  %v857_v7 = vld [vmem:[%s2394_s5 + $0x10] sm:$0xff] }
 0x47f   :  { %1971 = vmatprep.subr.bf16.mxu0 %v2099_v3  ;;  %v2286_v9 = vpack.c.bf16 %v858_v8, %v857_v7 }
 0x482   :  { %1973 = vmatpush3.bf16.msra.mxu0 %v2187_v12 }
 0x483   :  { %1982 = vmatprep.subr.bf16.mxu0 %v2099_v3 }
 0x550   :  { %v587_v47 = vpop.f32.mrb[6].mxu0 }
 0x551   :  { %v592_v48 = vrot.slane %v587_v47, 6  ;;  %v1789_v49 = vpop.f32.mrb[7].mxu0 }
 0x553   :  { %v594_v50 = vadd.f32 %v592_v48, %v2210_v15 }
 0x555   :  { %2053 = vtanh.f32 %v594_v50 }
 0x55f   :  { %v2054_v51 = vpop.eup %2053 }
 0x560   :  { %v597_v52 = vrot.slane %v2054_v51, 2  ;;  %v760_v58 = vsel %vm754_vm3, %v2052_v46, %v2054_v51 }
 0x562   :  { %1799 = vmatmul.mubr.msk.f32.vlgmr.msra.gmra.mrb[6].mxu1 %vm130_vm2, %v597_v52 }
 0x563   :  { %1820 = vmatprep.mubr.msk.f32.mxu1 %vm130_vm2, %v759_v42  ;;  %1977 = vmatpush3.bf16.msra.mxu1 %v1974_v0 }
 0x564   :  { %1979 = vmatprep.subr.bf16.mxu1 %v1978_v6 }
 0x567   :  { %1981 = vmatpush3.bf16.msra.mxu1 %v1978_v6 }
 0x568   :  { %1988 = vmatprep.subr.bf16.mxu1 %v2099_v3 }
 0x635   :  { %v666_v53 = vpop.f32.mrb[6].mxu1 }
 0x636   :  { %v671_v54 = vrot.slane %v666_v53, 4  ;;  %v1800_v55 = vpop.f32.mrb[7].mxu1 }
 0x638   :  { %v673_v56 = vadd.f32 %v671_v54, %v2210_v15 }
 0x63a   :  { %2055 = vtanh.f32 %v673_v56 }
 0x644   :  { %v2056_v57 = vpop.eup %2055 }
 0x645   :  { %v676_v59 = vrot.slane %v2056_v57, 4  ;;  %v761_v60 = vsel %vm756_vm4, %v760_v58, %v2056_v57 }
 0x647   :  { %1810 = vmatmul.mubr.msk.f32.vlgmr.msra.gmra.mrb[8].mxu0 %vm130_vm2, %v676_v59 }
 0x648   :  { %1831 = vmatprep.mubr.msk.f32.mxu0 %vm2100_vm1, %v2101_v10  ;;  %1984 = vmatpush3.bf16.msra.mxu0 %v2277_v5 }
 0x649   :  { %1985 = vmatprep.subr.bf16.mxu0 %v2099_v3 }
 0x64c   :  { %1987 = vmatpush3.bf16.msra.mxu0 %v2286_v9 }
 0x64d   :  { %1994 = vmatprep.subr.bf16.mxu0 %v2099_v3 }
 0x64f   :  { %1832 = vmatmul.mubr.f32.vlgmr.msra.gmra.mrb[10].mxu0 %v2101_v10 }
 0x650   :  { %1996 = vmatpush3.bf16.msra.mxu0 %v2277_v5  ;;  %1853 = vmatprep.mubr.msk.f32.mxu0 %vm2100_vm1, %v2101_v10 }
 0x651   :  { %1997 = vmatprep.subr.bf16.mxu0 %v2099_v3 }
 0x654   :  { %1999 = vmatpush3.bf16.msra.mxu0 %v2286_v9 }
 0x655   :  { %2006 = vmatprep.subr.bf16.mxu0 %v2099_v3 }
 0x71a   :  { %v745_v11 = vpop.f32.mrb[8].mxu0 }
 0x71b   :  { %v750_v12 = vrot.slane %v745_v11, 2  ;;  %v1811_v13 = vpop.f32.mrb[9].mxu0 }
 0x71d   :  { %v752_v14 = vadd.f32 %v750_v12, %v2210_v15  ;;  %v1574_v12 = vlaneseq }
 0x71f   :  { %2057 = vtanh.f32 %v752_v14  ;;  %v1575_v14 = vshrl.u32 %v1574_v12, 7 }
 0x722   :  { %v925_v15 = vpop.f32.mrb[10].mxu0 }
 0x723   :  { %v1833_v18 = vpop.f32.mrb[11].mxu0 }
 0x729   :  { %v2300_v16 = vpop.eup %2057 }
 0x72a   :  { %v762_v17 = vsel %vm758_vm5, %v761_v60, %v2300_v16  ;;  %v1486_v60 = vld [vmem:[%s2396_s7] sm:$0xff] }
 0x72b   :  { %1821 = vmatmul.mubr.msk.f32.vlgmr.msra.gmra.mrb[8].mxu1 %vm130_vm2, %v762_v17  ;;  %v2031_v62 = vpack.c.bf16 %v1487_v61, %v1486_v60  ;;  %v1620_v17 = vld [vmem:[%s2397_s8] ss:$0 sm:$0xff] }
 0x72c   :  { %1990 = vmatpush3.bf16.msra.mxu1 %v2277_v5  ;;  %1842 = vmatprep.mubr.msk.f32.mxu1 %vm2100_vm1, %v2101_v10 }
 0x72d   :  { %1991 = vmatprep.subr.bf16.mxu1 %v2099_v3 }
 0x730   :  { %1993 = vmatpush3.bf16.msra.mxu1 %v2286_v9 }
 0x731   :  { %2000 = vmatprep.subr.bf16.mxu1 %v2099_v3 }
 0x7fe   :  { %v1822_v20 = vpop.f32.mrb[8].mxu1 }
 0x7ff   :  { %v2314_v21 = vadd.f32 %v1822_v20, %v1610_v19  ;;  %v846_v22 = vpop.f32.mrb[9].mxu1 }
 0x800   :  { %v847_v23 = vadd.f32 %v1610_v19, %v846_v22 }
 0x802   :  { %v929_v24 = vadd.f32 %v925_v15, %v847_v23 }
 0x804   :  { %2059 = vtanh.f32 %v929_v24 }
 0x80e   :  { %v2060_v25 = vpop.eup %2059 }
 0x80f   :  { %1843 = vmatmul.mubr.msk.f32.vlgmr.msra.gmra.mrb[10].mxu1 %vm130_vm2, %v2060_v25 }
 0x810   :  { %2002 = vmatpush3.bf16.msra.mxu1 %v2277_v5  ;;  %1864 = vmatprep.mubr.msk.f32.mxu1 %vm2100_vm1, %v2101_v10 }
 0x811   :  { %2003 = vmatprep.subr.bf16.mxu1 %v2099_v3 }
 0x814   :  { %2005 = vmatpush3.bf16.msra.mxu1 %v2286_v9 }
 0x815   :  { %2012 = vmatprep.subr.bf16.mxu1 %v2099_v3 }
 0x8e2   :  { %v1000_v26 = vpop.f32.mrb[10].mxu1 }
 0x8e3   :  { %v1005_v27 = vrot.slane %v1000_v26, 6  ;;  %v1844_v28 = vpop.f32.mrb[11].mxu1 }
 0x8e5   :  { %v1007_v29 = vadd.f32 %v1005_v27, %v847_v23 }
 0x8e7   :  { %2061 = vtanh.f32 %v1007_v29 }
 0x8f1   :  { %v2062_v30 = vpop.eup %2061 }
 0x8f2   :  { %v1010_v31 = vrot.slane %v2062_v30, 2 }
 0x8f4   :  { %1854 = vmatmul.mubr.msk.f32.vlgmr.msra.gmra.mrb[12].mxu0 %vm130_vm2, %v1010_v31 }
 0x8f5   :  { %2008 = vmatpush3.bf16.msra.mxu0 %v2277_v5  ;;  %1875 = vmatprep.mubr.msk.f32.mxu0 %vm2100_vm1, %v2101_v10 }
 0x8f6   :  { %2009 = vmatprep.subr.bf16.mxu0 %v2099_v3 }
 0x8f9   :  { %2011 = vmatpush3.bf16.msra.mxu0 %v2286_v9 }
 0x8fa   :  { %2018 = vmatprep.subr.bf16.mxu0 %v2099_v3 }
 0x9c7   :  { %v1079_v32 = vpop.f32.mrb[12].mxu0 }
 0x9c8   :  { %v1084_v33 = vrot.slane %v1079_v32, 4  ;;  %v1855_v34 = vpop.f32.mrb[13].mxu0 }
 0x9ca   :  { %v1086_v35 = vadd.f32 %v1084_v33, %v847_v23 }
 0x9cc   :  { %2063 = vtanh.f32 %v1086_v35 }
 0x9d6   :  { %v2064_v36 = vpop.eup %2063 }
 0x9d7   :  { %v1089_v37 = vrot.slane %v2064_v36, 4 }
 0x9d9   :  { %1865 = vmatmul.mubr.msk.f32.vlgmr.msra.gmra.mrb[12].mxu1 %vm130_vm2, %v1089_v37 }
 0x9da   :  { %2014 = vmatpush3.bf16.msra.mxu1 %v2277_v5  ;;  %1886 = vmatprep.mubr.msk.f32.mxu1 %vm2100_vm1, %v2101_v10 }
 0x9db   :  { %2015 = vmatprep.subr.bf16.mxu1 %v2099_v3 }
 0x9de   :  { %2017 = vmatpush3.bf16.msra.mxu1 %v2286_v9 }
 0x9df   :  { %2024 = vmatprep.subr.bf16.mxu1 %v2099_v3 }
 0xaac   :  { %v1158_v38 = vpop.f32.mrb[12].mxu1 }
 0xaad   :  { %v1163_v39 = vrot.slane %v1158_v38, 2  ;;  %v1866_v40 = vpop.f32.mrb[13].mxu1 }
 0xaaf   :  { %v1165_v41 = vadd.f32 %v1163_v39, %v847_v23 }
 0xab1   :  { %2065 = vtanh.f32 %v1165_v41 }
 0xabb   :  { %v2066_v42 = vpop.eup %2065 }
 0xabc   :  { %v1168_v43 = vrot.slane %v2066_v42, 6 }
 0xabe   :  { %1876 = vmatmul.mubr.msk.f32.vlgmr.msra.gmra.mrb[14].mxu0 %vm130_vm2, %v1168_v43 }
 0xabf   :  { %2020 = vmatpush3.bf16.msra.mxu0 %v2277_v5  ;;  %1897 = vmatprep.mubr.msk.f32.mxu0 %vm2100_vm1, %v2101_v10 }
 0xac0   :  { %2021 = vmatprep.subr.bf16.mxu0 %v2099_v3 }
 0xac3   :  { %2023 = vmatpush3.bf16.msra.mxu0 %v2286_v9 }
 0xac4   :  { %2030 = vmatprep.subr.bf16.mxu0 %v2099_v3 }
 0xb91   :  { %v1237_v44 = vpop.f32.mrb[14].mxu0 }
 0xb92   :  { %v1241_v45 = vadd.f32 %v1237_v44, %v2314_v21  ;;  %v1877_v46 = vpop.f32.mrb[15].mxu0 }
 0xb94   :  { %2067 = vtanh.f32 %v1241_v45 }
 0xb9e   :  { %v2068_v47 = vpop.eup %2067 }
 0xb9f   :  { %1887 = vmatmul.mubr.msk.f32.vlgmr.msra.gmra.mrb[14].mxu1 %vm130_vm2, %v2068_v47 }
 0xba0   :  { %2026 = vmatpush3.bf16.msra.mxu1 %v2277_v5  ;;  %1908 = vmatprep.mubr.msk.f32.mxu1 %vm2100_vm1, %v2101_v10 }
 0xba1   :  { %2027 = vmatprep.subr.bf16.mxu1 %v2099_v3 }
 0xba4   :  { %2029 = vmatpush3.bf16.msra.mxu1 %v2286_v9  ;;  %v2102_v9 = vmov 1983009808  }
 0xba5   :  { %v1572_v11 = vunpack.c.l.s4 %v2102_v9 }
 0xba7   :  { %v1573_v13 = vunpack.c.0.s8 %v1572_v11 }
 0xba9   :  { %v1576_v15 = vsub.s32 %v1573_v13, %v1575_v14 }
 0xc72   :  { %v1312_v48 = vpop.f32.mrb[14].mxu1 }
 0xc73   :  { %v1317_v49 = vrot.slane %v1312_v48, 6  ;;  %v1888_v50 = vpop.f32.mrb[15].mxu1 }
 0xc75   :  { %v1319_v51 = vadd.f32 %v1317_v49, %v2314_v21 }
 0xc77   :  { %2069 = vtanh.f32 %v1319_v51 }
 0xc81   :  { %v2070_v52 = vpop.eup %2069 }
 0xc82   :  { %v1322_v53 = vrot.slane %v2070_v52, 2 }
 0xc84   :  { %1898 = vmatmul.mubr.msk.f32.vlgmr.msra.gmra.mrb[16].mxu0 %vm130_vm2, %v1322_v53 }
 0xc85   :  { %1919 = vmatprep.mubr.msk.f32.mxu0 %vm2100_vm1, %v2101_v10  ;;  %2032 = vmatpush3.bf16.msra.mxu0 %v2031_v62  ;;  %v1488_v10 = vld [vmem:[%s2396_s7 + $0x10] sm:$0xff] }
 0xc86   :  { %2033 = vmatprep.subr.bf16.mxu0 %v2099_v3  ;;  %v2034_v0 = vpack.c.bf16 %v1489_v63, %v1488_v10  ;;  %v1480_v3 = vrot.slane %v2300_v16, 6 }
 0xc89   :  { %2035 = vmatpush3.bf16.msra.mxu0 %v2034_v0 }
 0xd57   :  { %v1391_v54 = vpop.f32.mrb[16].mxu0 }
 0xd58   :  { %v1396_v55 = vrot.slane %v1391_v54, 4  ;;  %v1899_v56 = vpop.f32.mrb[17].mxu0 }
 0xd5a   :  { %v1398_v57 = vadd.f32 %v1396_v55, %v2314_v21 }
 0xd5c   :  { %2071 = vtanh.f32 %v1398_v57 }
 0xd66   :  { %v2072_v58 = vpop.eup %2071 }
 0xd67   :  { %v1401_v59 = vrot.slane %v2072_v58, 4 }
 0xd69   :  { %1909 = vmatmul.mubr.msk.f32.vlgmr.msra.gmra.mrb[16].mxu1 %vm130_vm2, %v1401_v59 }
 0xe3c   :  { %v1470_v1 = vpop.f32.mrb[16].mxu1 }
 0xe3d   :  { %v1475_v2 = vrot.slane %v1470_v1, 2  ;;  %v1910_v4 = vpop.f32.mrb[17].mxu1 }
 0xe3f   :  { %v1477_v5 = vadd.f32 %v1475_v2, %v2314_v21 }
 0xe41   :  { %2073 = vtanh.f32 %v1477_v5 }
 0xe4b   :  { %v2074_v6 = vpop.eup %2073 }
 0xe4c   :  { %v1483_v7 = vrot.slane %v2074_v6, 4 }
 0xe4e   :  { %v1485_v8 = vsel %vm754_vm3, %v1480_v3, %v1483_v7 }
 0xe4f   :  { %1920 = vmatmul.mubr.msk.f32.vlgmr.msra.gmra.mrb[18].mxu0 %vm130_vm2, %v1485_v8 }
 0xf22   :  { %v1566_v18 = vpop.f32.mrb[18].mxu0 }
 0xf23   :  { %v1567_v19 = vadd.f32 %v1620_v17, %v1566_v18  ;;  %v1921_v20 = vpop.f32.mrb[19].mxu0 }
 0xf25   :  { %v1577_v16 = vrot.slane %v1567_v19, %v1576_v15 }
 0xf27   :  { %v1578_v21 = vcombine.high %v1577_v16, %v1577_v16  ;;  %1582 = vst.msk [vmem:[#allocation2] sm:$0x3] %vm1581_vm6, %v1577_v16 }
 0xf29   :  { %1583 = vst.msk [vmem:[#allocation2 + $0x2] sm:$0x3] %vm1581_vm6, %v1578_v21 }
 0xf2a   :  { %2086 = shalt.err (!%p2083_p4)
}
 0xf2b   :  { %s2087_s26 = scalar_lea.hbm %s2398_s9, 64 }
 0xf2c   :  { %p2088_p5 = scmp.ne.s32.totalorder %s2398_s9, %s2087_s26  ;;  %p2091_p6 = scmp.lt.u32.totalorder %s2087_s26, %s2398_s9 }
 0xf2e   :  { %p2093_p7 = pnand %p2091_p6, %p2088_p5 }
 0xf30   :  { %2096 = shalt.err (!%p2093_p7)
}
 0xf31   :  { %s2104_s10 = smov 32   ;;  %s2105_s11 = smov 2  }
 0xf32   :  { %1595 = dma.vmem_to_hbm [thread:$0]  %s1590_s3, 64, %s2398_s9, [#allocation3], %s2104_s10, %s2104_s10, %s2105_s11  }
 0xf33   :  { %2097 = dma.done.wait [#allocation3], 64  }
 0xf34   :  { %2098 = vsyncadd [#allocation3], 4294967232 }
 0xf35   :  { %1599 = vsyncpa [#allocation3], 1 }

</bundles_post_ra>
